<compile_context>
chip_gen: v6e
topology: v6e:2x2x1
jax: 0.10.0
libtpu: 0.0.40
codegen_flags: <defaults>
</compile_context>

<pallas_src>
import functools

import jax
import jax.numpy as jnp
from jax.experimental import pallas as pl
from jax.experimental.pallas import tpu as pltpu


def _rope_kernel(scale_ref, bias_ref, out_ref, *, fold):
    # scale_ref/bias_ref: (1, W) per-lane frequency scale and phase bias
    # out_ref:            (block_rows, W)
    bs, w = out_ref.shape
    row0 = (pl.program_id(0) * (bs * fold)).astype(jnp.float32)
    # Original sequence index of stored row r is r * fold; the intra-fold row
    # offset is already baked into `bias` (as row_off * scale).
    t = (jax.lax.broadcasted_iota(jnp.int32, (bs, w), 0).astype(jnp.float32)
         * jnp.float32(fold) + row0)
    # sin on even columns, cos on odd columns, via the per-lane phase bias.
    out_ref[...] = jnp.cos(t * scale_ref[...] + bias_ref[...]).astype(out_ref.dtype)


def rotary_positional_encoding(max_seq_len: int, dim: int, base: float = 10000.0,
                               dtype=jnp.float32, block_rows=None):
    assert dim % 2 == 0, "dim must be even"
    w = 2 * dim

    # inv_freq = 1 / base**(arange(0, dim, 2)/dim), shape (dim//2,)
    inv_freq = 1.0 / (base ** (jnp.arange(0, dim, 2, dtype=jnp.float32) / dim))
    # emb = cat(freqs, freqs): emb column j uses inv_freq[j % (dim//2)]
    emb_inv = jnp.concatenate([inv_freq, inv_freq])                 # (dim,)
    # interleaved sin/cos: output column c uses emb column c//2
    inv_exp = jnp.repeat(emb_inv, 2)                                # (2*dim,)
    # sin(x) = cos(x - pi/2): even (sin) columns get a -pi/2 phase offset
    col = jnp.arange(w)
    phase_off = jnp.where(col % 2 == 0, -jnp.pi / 2.0, 0.0).astype(jnp.float32)

    # Fold rows so the stored slab's last dim is a multiple of 128 (lane-dense).
    if w % 128 == 0:
        fold = 1
    elif (128 % w == 0) and (max_seq_len % (128 // w) == 0):
        fold = 128 // w
    else:
        fold = 1   # fallback: still correct, just masked partial-lane stores
    stored_w = w * fold
    stored_s = max_seq_len // fold

    inv_tiled = jnp.tile(inv_exp, fold)                             # (stored_w,)
    off_tiled = jnp.tile(phase_off, fold)                           # (stored_w,)
    row_off = jnp.repeat(jnp.arange(fold, dtype=jnp.float32), w)    # (stored_w,)
    scale = inv_tiled[None, :]                                      # (1, stored_w)
    bias = (row_off * inv_tiled + off_tiled)[None, :]               # (1, stored_w)

    # Tile sizing: one output tile <= 4 MiB (<= 8 MiB double-buffered).
    if block_rows is None:
        budget_bytes = 4 * 1024 * 1024
        max_rows = max(budget_bytes // (stored_w * 4), 8)
        if stored_s <= max_rows:
            block_rows = stored_s                   # single grid step
        else:
            block_rows = (max_rows // 8) * 8        # multiple of 8 sublanes
    block_rows = min(block_rows, stored_s)

    grid = (pl.cdiv(stored_s, block_rows),)
    out2d = pl.pallas_call(
        functools.partial(_rope_kernel, fold=fold),
        out_shape=jax.ShapeDtypeStruct((stored_s, stored_w), dtype),
        grid=grid,
        in_specs=[pl.BlockSpec((1, stored_w), lambda i: (0, 0)),
                  pl.BlockSpec((1, stored_w), lambda i: (0, 0))],
        out_specs=pl.BlockSpec((block_rows, stored_w), lambda i: (i, 0)),
        compiler_params=pltpu.CompilerParams(
            dimension_semantics=("parallel",)),
    )(scale, bias)

    # Undo the lane-density row-fold: contiguous row-major reshape (no shuffle).
    return out2d.reshape(max_seq_len, w)


def _reference(max_seq_len: int, dim: int, base: float = 10000.0):
    inv_freq = 1.0 / (base ** (jnp.arange(0, dim, 2, dtype=jnp.float32) / dim))
    t = jnp.arange(max_seq_len, dtype=jnp.float32)
    freqs = jnp.einsum("i,j->ij", t, inv_freq)
    emb = jnp.concatenate([freqs, freqs], axis=-1)
    return jnp.stack([jnp.sin(emb), jnp.cos(emb)], axis=-1).reshape(max_seq_len, -1)


if __name__ == "__main__":
    # Module has no learned parameters / tensor inputs; key kept for convention.
    _ = jax.random.PRNGKey(0)

    # Small shape implied by the module (hidden dim 32, seq 8): exercises the
    # row-fold path (2*dim = 64 -> stored width 128).
    dim, max_seq_len = 32, 8
    out = jax.block_until_ready(rotary_positional_encoding(max_seq_len, dim))
    ref = _reference(max_seq_len, dim)
    assert out.shape == (max_seq_len, 2 * dim)
    assert jnp.allclose(out, ref, atol=1e-5, rtol=1e-5)

    # Exercise the already-lane-dense path (2*dim = 128) with a partial last
    # block (40 rows, 16-row tiles -> grid of 3, last block half-valid).
    dim2, seq2 = 64, 40
    out2 = jax.block_until_ready(
        rotary_positional_encoding(seq2, dim2, block_rows=16))
    ref2 = _reference(seq2, dim2)
    assert out2.shape == (seq2, 2 * dim2)
    assert jnp.allclose(out2, ref2, atol=1e-5, rtol=1e-5)

    print("KERNEL_OK")
</pallas_src>

<mosaic_0001>
module attributes {stable_mosaic.version = 11 : i64} {
  func.func @_rope_kernel(%arg0: i32, %arg1: memref<1x128xf32, #tpu.memory_space<vmem>>, %arg2: memref<1x128xf32, #tpu.memory_space<vmem>>, %arg3: memref<4x128xf32, #tpu.memory_space<vmem>>) attributes {dimension_semantics = [#tpu.dimension_semantics<parallel>], iteration_bounds = array<i64: 1>, scalar_prefetch = 0 : i64, scratch_operands = 0 : i64, tpu.core_type = #tpu.core_type<tc>, window_params = [{pipeline_mode = #tpu.pipeline_mode<synchronous>, transform_indices = @transform_0, window_bounds = array<i64: 1, 128>}, {pipeline_mode = #tpu.pipeline_mode<synchronous>, transform_indices = @transform_1, window_bounds = array<i64: 1, 128>}, {transform_indices = @transform_2, window_bounds = array<i64: 4, 128>}]} {
    %c8_i32 = arith.constant 8 : i32
    %0 = arith.muli %arg0, %c8_i32 : i32
    %1 = arith.sitofp %0 : i32 to f32
    %2 = tpu.iota {dimensions = array<i32: 0>} : vector<4x128xi32>
    %3 = arith.sitofp %2 : vector<4x128xi32> to vector<4x128xf32>
    %cst = arith.constant 2.000000e+00 : f32
    %4 = vector.broadcast %cst : f32 to vector<4x128xf32>
    %5 = arith.mulf %3, %4 : vector<4x128xf32>
    %6 = vector.broadcast %1 : f32 to vector<4x128xf32>
    %7 = arith.addf %5, %6 : vector<4x128xf32>
    %c0 = arith.constant 0 : index
    %c0_0 = arith.constant 0 : index
    %8 = vector.load %arg1[%c0, %c0_0] : memref<1x128xf32, #tpu.memory_space<vmem>>, vector<1x128xf32>
    %9 = vector.broadcast %8 : vector<1x128xf32> to vector<4x128xf32>
    %10 = arith.mulf %7, %9 : vector<4x128xf32>
    %c0_1 = arith.constant 0 : index
    %c0_2 = arith.constant 0 : index
    %11 = vector.load %arg2[%c0_1, %c0_2] : memref<1x128xf32, #tpu.memory_space<vmem>>, vector<1x128xf32>
    %12 = vector.broadcast %11 : vector<1x128xf32> to vector<4x128xf32>
    %13 = arith.addf %10, %12 : vector<4x128xf32>
    %14 = math.cos %13 : vector<4x128xf32>
    %c0_3 = arith.constant 0 : index
    %c0_4 = arith.constant 0 : index
    %15 = vector.load %arg3[%c0_3, %c0_4] : memref<4x128xf32, #tpu.memory_space<vmem>>, vector<4x128xf32>
    tpu.vector_store %arg3[%c0_3, %c0_4], %14 {strides = array<i32>} : memref<4x128xf32, #tpu.memory_space<vmem>>, vector<4x128xf32>,
    return
  }
  func.func @transform_0(%arg0: i32) -> (i32, i32) {
    %c0_i32 = arith.constant 0 : i32
    %c0_i32_0 = arith.constant 0 : i32
    %c0_i32_1 = arith.constant 0 : i32
    return %c0_i32, %c0_i32_0 : i32, i32
  }
  func.func @transform_1(%arg0: i32) -> (i32, i32) {
    %c0_i32 = arith.constant 0 : i32
    %c0_i32_0 = arith.constant 0 : i32
    %c0_i32_1 = arith.constant 0 : i32
    return %c0_i32, %c0_i32_0 : i32, i32
  }
  func.func @transform_2(%arg0: i32) -> (i32, i32) {
    %c0_i32 = arith.constant 0 : i32
    %c0_i32_0 = arith.constant 0 : i32
    return %arg0, %c0_i32 : i32, i32
  }
}

</mosaic_0001>

<bundles_post_ra>
// kernel: tpu_custom_call.1
= control target key start
LH: loop header
LB: loop body
LE: loop exit
PB: predicated region body
PF: predicated region fallthrough
CT: control target
= control target key end

     0   :  { %7 = vsyncpa [#allocation3], 0  ;;  %s286_s0 = inlined_call_operand.hbm [shape: f32[1,128], index: 0, kind: input, shape index: {}]   ;;  %s287_s1 = inlined_call_operand.vmem [shape: f32[1,128], index: 1, kind: input, shape index: {}]   ;;  %s288_s2 = inlined_call_operand.hbm [shape: f32[4,128], index: 2, kind: output, shape index: {}]  }
   0x1   :  { %8 = vsyncpa [#allocation4], 0  ;;  %s233_s9 = smov [#allocation2]  }
   0x2   :  { %s15_s10 = sshll.u32 %s233_s9, 4  ;;  %s16_s10 = int_to_ptr.vmem [resolvable:$true] %s15_s10 }
   0x3   :  { %s197_s11 = scalar_lea.vmem %s16_s10, 16  ;;  %s201_s12 = scalar_lea.vmem %s16_s10, 32 }
   0x4   :  { %p198_p0 = scmp.ne.s32.totalorder %s16_s10, %s197_s11  ;;  %p202_p1 = scmp.lt.s32.totalorder %s16_s10, %s16_s10 }
   0x5   :  { %p203_p2 = scmp.lt.s32.totalorder %s201_s12, %s197_s11 }
   0x7   :  { %p204_p3 = por %p203_p2, %p202_p1 }
   0x9   :  { %p205_p4 = pnand %p204_p3, %p198_p0 }
   0xb   :  { %208 = shalt.err (!%p205_p4)
}
   0xc   :  { %18 = dma.hbm_to_vmem [thread:$0]  %s286_s0, 16, %s16_s10, [#allocation3]  }
   0xd   :  { %229 = dma.done.wait [#allocation3], 16  }
   0xe   :  { %230 = vsyncadd [#allocation3], 4294967280  ;;  %v26_v0 = vlaneseq  ;;  %v167_v4 = vld [vmem:[#allocation2] ss:$0 sm:$0xff]  ;;  %v234_v19 = vmov 683565275  }
   0xf   :  { %v168_v5 = vld [vmem:[%s287_s1] ss:$0 sm:$0xff]  ;;  %v235_v21 = vmov 2475754826   ;;  %v236_v23 = vmov 2131351028  }
  0x10   :  { %v27_v1 = vshrl.u32 %v26_v0, 7  ;;  %v237_v25 = vmov 2102212464   ;;  %v238_v27 = vmov 920167782   ;;  %s240_s0 = smov [#allocation5]  }
  0x11   :  { %v239_v34 = vmov 1326507024   ;;  %s158_s1 = sshll.u32 %s240_s0, 4  ;;  %s159_s1 = int_to_ptr.vmem [resolvable:$true] %s158_s1 }
  0x12   :  { %v28_v2 = vcvt.s32.f32 %v27_v1  ;;  %s209_s17 = scalar_lea.vmem %s159_s1, 64  ;;  %p214_p6 = scmp.lt.s32.totalorder %s159_s1, %s159_s1 }
  0x13   :  { %p210_p5 = scmp.ne.s32.totalorder %s159_s1, %s209_s17  ;;  %p215_p7 = scmp.lt.s32.totalorder %s209_s17, %s209_s17 }
  0x14   :  { %v29_v3 = vmul.f32 2.0, %v28_v2 }
  0x15   :  { %p216_p8 = por %p215_p7, %p214_p6 }
  0x16   :  { %v39_v6 = vmul.f32 %v167_v4, %v29_v3 }
  0x17   :  { %p217_p9 = pnand %p216_p8, %p210_p5 }
  0x18   :  { %v262_v7 = vadd.f32 %v168_v5, %v39_v6 }
  0x1a   :  { %v51_v8 = vand.u32 2139095040, %v262_v7  ;;  %v48_v10 = vand.u32 2147483647, %v262_v7  ;;  %vm50_vm7 = vcmp.lt.s32.totalorder %v262_v7, 0  ;;  %vm140_vm12 = vweird.f32 %v262_v7 }
  0x1c   :  { %v52_v9 = vshrl.u32 %v51_v8, 23  ;;  %v55_v13 = vand.u32 8388607, %v48_v10  ;;  %vm49_vm8 = vcmp.le.f32.partialorder %v48_v10, 0.7853982 }
  0x1e   :  { %v169_v11 = vadd.s32 4294967169, %v52_v9  ;;  %v56_v16 = vor.u32 8388608, %v55_v13 }
  0x20   :  { %v58_v12 = vadd.s32 1, %v169_v11  ;;  %v96_v36 = vshll.u32 %v56_v16, 8 }
  0x22   :  { %vm59_vm0 = vcmp.gt.s32.totalorder %v58_v12, 0 }
  0x23   :  { %v60_v14 = vsel %vm59_vm0, %v58_v12, 0 }
  0x24   :  { %v62_v15 = vand.u32 31, %v60_v14  ;;  %v61_v17 = vshrl.u32 %v60_v14, 5 }
  0x26   :  { %v63_v18 = vsub.s32 32, %v62_v15  ;;  %v65_v20 = vshll.u32 %v234_v19, %v62_v15  ;;  %v68_v22 = vshll.u32 %v235_v21, %v62_v15  ;;  %v71_v24 = vshll.u32 %v236_v23, %v62_v15 }
  0x27   :  { %v74_v26 = vshll.u32 %v237_v25, %v62_v15  ;;  %v77_v28 = vshll.u32 %v238_v27, %v62_v15  ;;  %vm80_vm1 = vcmp.lt.s32.totalorder %v61_v17, 1  ;;  %vm83_vm2 = vcmp.lt.s32.totalorder %v61_v17, 4 }
  0x28   :  { %v64_v29 = vshrl.u32 %v234_v19, %v63_v18  ;;  %v66_v30 = vshrl.u32 %v235_v21, %v63_v18  ;;  %v69_v31 = vshrl.u32 %v236_v23, %v63_v18  ;;  %v72_v32 = vshrl.u32 %v237_v25, %v63_v18 }
  0x29   :  { %v75_v33 = vshrl.u32 %v238_v27, %v63_v18  ;;  %v78_v35 = vshrl.u32 %v239_v34, %v63_v18  ;;  %vm81_vm3 = vcmp.lt.s32.totalorder %v61_v17, 2  ;;  %vm82_vm4 = vcmp.lt.s32.totalorder %v61_v17, 3 }
  0x2a   :  { %v67_v37 = vor.u32 %v66_v30, %v65_v20  ;;  %v70_v38 = vor.u32 %v69_v31, %v68_v22  ;;  %v73_v39 = vor.u32 %v72_v32, %v71_v24 }
  0x2b   :  { %v76_v40 = vor.u32 %v75_v33, %v74_v26  ;;  %v79_v41 = vor.u32 %v78_v35, %v77_v28 }
  0x2c   :  { %v84_v42 = vsel %vm80_vm1, %v64_v29, %v67_v37  ;;  %v85_v43 = vsel %vm83_vm2, %v73_v39, 2102212464  ;;  %v88_v44 = vsel %vm80_vm1, %v67_v37, %v70_v38  ;;  %v92_v45 = vsel %vm80_vm1, %v70_v38, %v73_v39 }
  0x2d   :  { %v86_v46 = vsel %vm82_vm4, %v70_v38, %v85_v43  ;;  %v89_v47 = vsel %vm83_vm2, %v76_v40, 920167782  ;;  %v93_v48 = vsel %vm83_vm2, %v79_v41, 1326507024 }
  0x2e   :  { %v90_v49 = vsel %vm82_vm4, %v73_v39, %v89_v47  ;;  %v94_v50 = vsel %vm82_vm4, %v76_v40, %v93_v48  ;;  %v87_v51 = vsel %vm81_vm3, %v84_v42, %v86_v46 }
  0x2f   :  { %v91_v52 = vsel %vm81_vm3, %v88_v44, %v90_v49  ;;  %v95_v53 = vsel %vm81_vm3, %v92_v45, %v94_v50  ;;  %v103_v58 = vmul.u32 %v96_v36, %v87_v51 }
  0x30   :  { %v268_v54 = vmul.u32.u64.low %v96_v36, %v95_v53  ;;  %v269_v55 = vmul.u32.u64.high %v96_v36, %v95_v53, %v268_v54  ;;  %v271_v56 = vmul.u32.u64.low %v96_v36, %v91_v52  ;;  %v272_v57 = vmul.u32.u64.high %v96_v36, %v91_v52, %v271_v56 }
  0x32   :  { %vm105_vm5 = vc.u32 %v269_v55, %v271_v56  ;;  %v106_v59 = vadd.s32 1, %v272_v57  ;;  %v104_v6 = vadd.s32 %v271_v56, %v269_v55 }
  0x34   :  { %v107_v60 = vsel %vm105_vm5, %v106_v59, %v272_v57 }
  0x35   :  { %v108_v61 = vadd.s32 %v107_v60, %v103_v58 }
  0x37   :  { %v109_v62 = vadd.s32 536870912, %v108_v61 }
  0x39   :  { %v110_v63 = vshrl.u32 %v109_v62, 30 }
  0x3b   :  { %v111_v0 = vshll.u32 %v110_v63, 30  ;;  %v134_v23 = vsub.s32 4, %v110_v63 }
  0x3d   :  { %v112_v1 = vsub.s32 %v108_v61, %v111_v0  ;;  %v135_v25 = vsel %vm50_vm7, %v134_v23, %v110_v63 }
  0x3e   :  { %v137_v26 = vsel %vm49_vm8, 0, %v135_v25 }
  0x3f   :  { %v114_v2 = vsub.s32 0, %v112_v1  ;;  %v141_v27 = vand.u32 3, %v137_v26 }
  0x41   :  { %v170_v3 = vmin.u32 %v114_v2, %v112_v1  ;;  %vm146_vm9 = vcmp.eq.s32.totalorder %v141_v27, 2  ;;  %vm143_vm10 = vcmp.eq.s32.totalorder %v141_v27, 0  ;;  %vm142_vm11 = vcmp.lt.s32.totalorder %v141_v27, 2 }
  0x43   :  { %v116_v4 = vclz %v170_v3 }
  0x45   :  { %v171_v5 = vadd.s32 4294967294, %v116_v4 }
  0x47   :  { %vm172_vm6 = vcmp.lt.s32.totalorder %v171_v5, 0 }
  0x48   :  { %v119_v8 = vsel %vm172_vm6, 0, %v171_v5 }
  0x49   :  { %v120_v9 = vsub.s32 32, %v119_v8  ;;  %v121_v11 = vshll.u32 %v112_v1, %v119_v8  ;;  %v124_v12 = vsub.s32 4294967266, %v119_v8 }
  0x4b   :  { %v122_v13 = vshrl.u32 %v104_v6, %v120_v9  ;;  %v125_v14 = vadd.s32 127, %v124_v12 }
  0x4d   :  { %v123_v15 = vor.u32 %v122_v13, %v121_v11  ;;  %v126_v16 = vshll.u32 %v125_v14, 23 }
  0x4f   :  { %v127_v17 = vor.u32 4788187, %v126_v16  ;;  %v130_v18 = vcvt.s32.f32 %v123_v15 }
  0x51   :  { %v128_v19 = vand.u32 2147483647, %v127_v17 }
  0x53   :  { %v131_v20 = vmul.f32 %v130_v18, %v128_v19 }
  0x55   :  { %v132_v21 = vxor.u32 2147483648, %v131_v20 }
  0x57   :  { %v133_v22 = vsel %vm50_vm7, %v132_v21, %v131_v20 }
  0x58   :  { %v136_v24 = vsel %vm49_vm8, %v262_v7, %v133_v22 }
  0x59   :  { %185 = vcosq.f32 %v136_v24 }
  0x5a   :  { %187 = vsinq.f32 %v136_v24 }
  0x66   :  { %v186_v28 = vpop.eup %185 }
  0x67   :  { %v188_v29 = vpop.eup %187  ;;  %v147_v30 = vxor.u32 2147483648, %v186_v28 }
  0x68   :  { %v144_v31 = vxor.u32 2147483648, %v188_v29 }
  0x69   :  { %v148_v10 = vsel %vm146_vm9, %v147_v30, %v188_v29 }
  0x6a   :  { %v145_v32 = vsel %vm143_vm10, %v186_v28, %v144_v31 }
  0x6b   :  { %v149_v33 = vsel %vm142_vm11, %v145_v32, %v148_v10 }
  0x6c   :  { %v150_v34 = vsel %vm140_vm12, nan, %v149_v33 }
  0x6d   :  { %151 = vst [vmem:[#allocation5] sm:$0xf] %v150_v34 }
  0x6e   :  { %220 = shalt.err (!%p217_p9)
}
  0x6f   :  { %161 = dma.vmem_to_hbm [thread:$0]  %s159_s1, 64, %s288_s2, [#allocation4]  }
  0x70   :  { %231 = dma.done.wait [#allocation4], 64  }
  0x71   :  { %232 = vsyncadd [#allocation4], 4294967232 }
  0x72   :  { %165 = vsyncpa [#allocation3], 1 }
  0x73   :  { %166 = vsyncpa [#allocation4], 1 }

</bundles_post_ra>
